<compile_context>
chip_gen: v6e
topology: v6e:2x2x1
jax: 0.10.0
libtpu: 0.0.40
codegen_flags: <defaults>
</compile_context>

<pallas_src>
import functools

import jax
import jax.numpy as jnp
from jax import lax
from jax.experimental import pallas as pl
from jax.experimental.pallas import tpu as pltpu


# ---------------------------------------------------------------------------
# Fused kernel: per entity tile
#   z      = x_ent @ W_e_cat + x_lit @ W_l_cat + b_cat          [Tn, 2D] f32
#   g_emb  = tanh(z[:, :D]);  gate = sigmoid(z[:, D:])
#   gated  = (1 - gate) * x_ent + gate * g_emb                  [Tn, D]  f32
#   out    = sigmoid(obj @ gated.T + bias_tile)                 [B, Tn]  f32
# ---------------------------------------------------------------------------
def fused_gate_pred_kernel(obj_ref, ent_ref, lit_ref,
                           we_ref, wl_ref, bcat_ref, bias_ref,
                           out_ref):
    x_ent = ent_ref[...]                       # [Tn, D]  bf16
    x_lit = lit_ref[...]                       # [Tn, L]  bf16

    # Two matmuls instead of four: tanh-half and sigmoid-half share one pass.
    z = (jnp.dot(x_ent, we_ref[...], preferred_element_type=jnp.float32)
         + jnp.dot(x_lit, wl_ref[...], preferred_element_type=jnp.float32)
         + bcat_ref[...])                      # [Tn, 2D] f32

    d = x_ent.shape[1]
    g_emb = jnp.tanh(z[:, :d])
    gate = jax.nn.sigmoid(z[:, d:])
    x_ent_f32 = x_ent.astype(jnp.float32)
    gated = (1.0 - gate) * x_ent_f32 + gate * g_emb       # [Tn, D] f32

    # scores[B, Tn] = obj @ gated.T, via dot_general contracting last dims
    # (no explicit .T / XLU relayout of the entity tile).
    scores = lax.dot_general(
        obj_ref[...], gated.astype(jnp.bfloat16),
        dimension_numbers=(((1,), (1,)), ((), ())),
        preferred_element_type=jnp.float32)
    out_ref[...] = jax.nn.sigmoid(scores + bias_ref[...])


def fused_gate_pred(obj_bf16, emb_e_bf16, num_lit_bf16,
                    we_cat_bf16, wl_cat_bf16, b_cat, bias_row,
                    *, tile_n, vmem_limit_bytes=32 * 1024 * 1024):
    """obj: [B, D] bf16; emb_e: [N, D] bf16; num_lit: [N, L] bf16 -> [B, N] f32."""
    B, D = obj_bf16.shape
    N, L = num_lit_bf16.shape
    assert emb_e_bf16.shape == (N, D)
    assert N % tile_n == 0, (N, tile_n)

    grid = (N // tile_n,)
    return pl.pallas_call(
        fused_gate_pred_kernel,
        out_shape=jax.ShapeDtypeStruct((B, N), jnp.float32),
        grid_spec=pltpu.PrefetchScalarGridSpec(
            num_scalar_prefetch=0,
            grid=grid,
            in_specs=[
                pl.BlockSpec((B, D), lambda i: (0, 0)),        # obj (constant)
                pl.BlockSpec((tile_n, D), lambda i: (i, 0)),   # emb_e tile
                pl.BlockSpec((tile_n, L), lambda i: (i, 0)),   # num_lit tile
                pl.BlockSpec((D, 2 * D), lambda i: (0, 0)),    # W_e_cat
                pl.BlockSpec((L, 2 * D), lambda i: (0, 0)),    # W_l_cat
                pl.BlockSpec((1, 2 * D), lambda i: (0, 0)),    # b_cat
                pl.BlockSpec((1, tile_n), lambda i: (0, i)),   # entity bias tile
            ],
            out_specs=pl.BlockSpec((B, tile_n), lambda i: (0, i)),
        ),
        compiler_params=pltpu.CompilerParams(
            dimension_semantics=("parallel",),
            vmem_limit_bytes=vmem_limit_bytes),
    )(obj_bf16, emb_e_bf16, num_lit_bf16,
      we_cat_bf16, wl_cat_bf16, b_cat, bias_row)


# ---------------------------------------------------------------------------
# Batch-side gate ([B, D] only) — plain JAX, f32.
# ---------------------------------------------------------------------------
def _gate_jax(x_ent, x_lit, we_cat, wl_cat, b_cat):
    z = x_ent @ we_cat + x_lit @ wl_cat + b_cat
    d = x_ent.shape[1]
    g_emb = jnp.tanh(z[:, :d])
    g = jax.nn.sigmoid(z[:, d:])
    return (1.0 - g) * x_ent + g * g_emb


# ---------------------------------------------------------------------------
# Full forward (mirrors DistMultLiteral_gate.forward in eval mode)
# ---------------------------------------------------------------------------
@functools.partial(jax.jit, static_argnames=("tile_n",))
def distmult_literal_gate_forward(params, e1, rel, *, tile_n):
    # index_select gathers (glue, plain JAX)
    e1_emb = jnp.take(params["emb_e"], e1, axis=0)          # [B, D]
    rel_emb = jnp.take(params["emb_rel"], rel, axis=0)      # [B, D]
    e1_num_lit = jnp.take(params["num_lit"], e1, axis=0)    # [B, L]

    # Batch-side gate: tiny, done in f32 JAX (no redundant pallas_call).
    e1_gated = _gate_jax(e1_emb, e1_num_lit,
                         params["w_e_cat"], params["w_l_cat"], params["b_cat"])

    # TODO(synk): nn.Dropout(input_drop) is identity in eval mode; training-mode
    # stochastic dropout is not implemented here.
    obj = (e1_gated * rel_emb).astype(jnp.bfloat16)         # [B, D]

    # Entity-side gate fused into the N-tiled prediction kernel; MXU operands
    # stream as bf16, gated entity matrix never written back to HBM.
    pred = fused_gate_pred(
        obj,
        params["emb_e"].astype(jnp.bfloat16),
        params["num_lit"].astype(jnp.bfloat16),
        params["w_e_cat"].astype(jnp.bfloat16),
        params["w_l_cat"].astype(jnp.bfloat16),
        params["b_cat"],
        params["bias"],
        tile_n=tile_n)
    return pred, 0


# ---------------------------------------------------------------------------
# Deterministic parameter construction (synthetic weights, xavier-ish scales)
# ---------------------------------------------------------------------------
def make_params(key, num_ents, num_rels, emb_dim, num_att):
    ks = jax.random.split(key, 6)
    input_size = emb_dim + num_att

    def xavier(k, shape):
        fan_in, fan_out = shape[0], shape[1]
        std = (2.0 / (fan_in + fan_out)) ** 0.5
        return std * jax.random.normal(k, shape, dtype=jnp.float32)

    # nn.Linear(input_size, emb_dim) weight is [out, in]; stored transposed
    # [in, out] and split into the x_ent rows / x_lit rows (the Gate concats
    # [x_ent, x_lit] before this Linear).  The two bias-free gate Linears
    # (g1: [D, D], g2: [L, D]) are column-concatenated with them so the kernel
    # issues two matmuls instead of four:
    #   W_e_cat = [wg_e | wg1] -> [D, 2D]
    #   W_l_cat = [wg_l | wg2] -> [L, 2D]
    #   b_cat   = [b_g  | gate_bias] -> [1, 2D]
    wg_full = xavier(ks[0], (input_size, emb_dim))          # [D+L, D]
    wg_e, wg_l = wg_full[:emb_dim, :], wg_full[emb_dim:, :]
    wg1 = xavier(ks[1], (emb_dim, emb_dim))
    wg2 = xavier(ks[2], (num_att, emb_dim))

    params = {
        "emb_e": xavier(ks[3], (num_ents, emb_dim)),        # [N, D]
        "emb_rel": xavier(ks[4], (num_rels * 2, emb_dim)),  # [2R, D]
        "num_lit": jax.random.uniform(ks[5], (num_ents, num_att),
                                      dtype=jnp.float32),   # [N, L]
        "w_e_cat": jnp.concatenate([wg_e, wg1], axis=1),    # [D, 2D]
        "w_l_cat": jnp.concatenate([wg_l, wg2], axis=1),    # [L, 2D]
        "b_cat": jnp.zeros((1, 2 * emb_dim), jnp.float32),
        "bias": jnp.zeros((1, num_ents), jnp.float32),      # entity bias
    }
    return params


def _reference_forward(params, e1, rel):
    """Pure-JAX f32 reference for a correctness check."""
    d = params["emb_e"].shape[1]
    we, w1 = params["w_e_cat"][:, :d], params["w_e_cat"][:, d:]
    wl, w2 = params["w_l_cat"][:, :d], params["w_l_cat"][:, d:]
    bg, gb = params["b_cat"][:, :d], params["b_cat"][:, d:]

    def gate(x_ent, x_lit):
        g_emb = jnp.tanh(x_ent @ we + x_lit @ wl + bg)
        g = jax.nn.sigmoid(x_ent @ w1 + x_lit @ w2 + gb)
        return (1.0 - g) * x_ent + g * g_emb

    e1_g = gate(params["emb_e"][e1], params["num_lit"][e1])
    rel_emb = params["emb_rel"][rel]
    e2_g = gate(params["emb_e"], params["num_lit"])
    return jax.nn.sigmoid((e1_g * rel_emb) @ e2_g.T + params["bias"])


if __name__ == "__main__":
    # Small, deterministic synthetic shapes (lane-dense D; real configs should
    # also keep emb_dim a multiple of 128).
    num_ents, num_rels = 512, 8
    emb_dim, num_att = 128, 16
    batch = 8
    tile_n = 128   # demo tile; size against VMEM (1024-2048 at D=256) in prod

    key = jax.random.PRNGKey(0)
    pkey, ik1, ik2 = jax.random.split(key, 3)
    params = make_params(pkey, num_ents, num_rels, emb_dim, num_att)

    e1 = jax.random.randint(ik1, (batch,), 0, num_ents, dtype=jnp.int32)
    rel = jax.random.randint(ik2, (batch,), 0, num_rels * 2, dtype=jnp.int32)

    pred, _ = distmult_literal_gate_forward(params, e1, rel, tile_n=tile_n)
    pred = jax.block_until_ready(pred)

    ref = _reference_forward(params, e1, rel)
    assert pred.shape == (batch, num_ents)
    # bf16 MXU operands (f32 accumulation) -> looser tolerance than pure f32.
    assert jnp.allclose(pred, ref, atol=2e-2, rtol=2e-2), float(
        jnp.max(jnp.abs(pred - ref)))

    print("KERNEL_OK")
</pallas_src>

<mosaic_0001>
module attributes {stable_mosaic.version = 11 : i64} {
  func.func @fused_gate_pred_kernel(%arg0: i32, %arg1: memref<8x128xbf16, #tpu.memory_space<vmem>>, %arg2: memref<128x128xbf16, #tpu.memory_space<vmem>>, %arg3: memref<128x16xbf16, #tpu.memory_space<vmem>>, %arg4: memref<128x256xbf16, #tpu.memory_space<vmem>>, %arg5: memref<16x256xbf16, #tpu.memory_space<vmem>>, %arg6: memref<1x256xf32, #tpu.memory_space<vmem>>, %arg7: memref<1x128xf32, #tpu.memory_space<vmem>>, %arg8: memref<8x128xf32, #tpu.memory_space<vmem>>) attributes {dimension_semantics = [#tpu.dimension_semantics<parallel>], iteration_bounds = array<i64: 4>, scalar_prefetch = 0 : i64, scratch_operands = 0 : i64, tpu.core_type = #tpu.core_type<tc>, window_params = [{pipeline_mode = #tpu.pipeline_mode<synchronous>, transform_indices = @transform_0, window_bounds = array<i64: 8, 128>}, {transform_indices = @transform_1, window_bounds = array<i64: 128, 128>}, {transform_indices = @transform_2, window_bounds = array<i64: 128, 16>}, {pipeline_mode = #tpu.pipeline_mode<synchronous>, transform_indices = @transform_3, window_bounds = array<i64: 128, 256>}, {pipeline_mode = #tpu.pipeline_mode<synchronous>, transform_indices = @transform_4, window_bounds = array<i64: 16, 256>}, {pipeline_mode = #tpu.pipeline_mode<synchronous>, transform_indices = @transform_5, window_bounds = array<i64: 1, 256>}, {transform_indices = @transform_6, window_bounds = array<i64: 1, 128>}, {transform_indices = @transform_7, window_bounds = array<i64: 8, 128>}]} {
    %c0 = arith.constant 0 : index
    %c0_0 = arith.constant 0 : index
    %0 = vector.load %arg2[%c0, %c0_0] : memref<128x128xbf16, #tpu.memory_space<vmem>>, vector<128x128xbf16>
    %c0_1 = arith.constant 0 : index
    %c0_2 = arith.constant 0 : index
    %1 = vector.load %arg3[%c0_1, %c0_2] : memref<128x16xbf16, #tpu.memory_space<vmem>>, vector<128x16xbf16>
    %c0_3 = arith.constant 0 : index
    %c0_4 = arith.constant 0 : index
    %2 = vector.load %arg4[%c0_3, %c0_4] : memref<128x256xbf16, #tpu.memory_space<vmem>>, vector<128x256xbf16>
    %cst = arith.constant dense<0.000000e+00> : vector<128x256xf32>
    %3 = tpu.matmul %0, %2, %cst {dimension_numbers = #tpu.dot_dimension_numbers<[1], [0], [0], [1], [0, 0, 1, 1], [], []>} : vector<128x128xbf16>, vector<128x256xbf16>, vector<128x256xf32> -> vector<128x256xf32>
    %c0_5 = arith.constant 0 : index
    %c0_6 = arith.constant 0 : index
    %4 = vector.load %arg5[%c0_5, %c0_6] : memref<16x256xbf16, #tpu.memory_space<vmem>>, vector<16x256xbf16>
    %cst_7 = arith.constant dense<0.000000e+00> : vector<128x256xf32>
    %5 = tpu.matmul %1, %4, %cst_7 {dimension_numbers = #tpu.dot_dimension_numbers<[1], [0], [0], [1], [0, 0, 1, 1], [], []>} : vector<128x16xbf16>, vector<16x256xbf16>, vector<128x256xf32> -> vector<128x256xf32>
    %6 = arith.addf %3, %5 : vector<128x256xf32>
    %c0_8 = arith.constant 0 : index
    %c0_9 = arith.constant 0 : index
    %7 = vector.load %arg6[%c0_8, %c0_9] : memref<1x256xf32, #tpu.memory_space<vmem>>, vector<1x256xf32>
    %8 = vector.broadcast %7 : vector<1x256xf32> to vector<128x256xf32>
    %9 = arith.addf %6, %8 : vector<128x256xf32>
    %10 = vector.extract_strided_slice %9 {offsets = [0, 0], sizes = [128, 128], strides = [1, 1]} : vector<128x256xf32> to vector<128x128xf32>
    %11 = math.tanh %10 : vector<128x128xf32>
    %12 = vector.extract_strided_slice %9 {offsets = [0, 128], sizes = [128, 128], strides = [1, 1]} : vector<128x256xf32> to vector<128x128xf32>
    %13 = arith.negf %12 : vector<128x128xf32>
    %14 = math.exp %13 : vector<128x128xf32>
    %cst_10 = arith.constant 1.000000e+00 : f32
    %15 = vector.broadcast %cst_10 : f32 to vector<128x128xf32>
    %16 = arith.addf %15, %14 : vector<128x128xf32>
    %17 = arith.divf %15, %16 : vector<128x128xf32>
    %18 = arith.extf %0 : vector<128x128xbf16> to vector<128x128xf32>
    %cst_11 = arith.constant 1.000000e+00 : f32
    %19 = vector.broadcast %cst_11 : f32 to vector<128x128xf32>
    %20 = arith.subf %19, %17 : vector<128x128xf32>
    %21 = arith.mulf %20, %18 : vector<128x128xf32>
    %22 = arith.mulf %17, %11 : vector<128x128xf32>
    %23 = arith.addf %21, %22 : vector<128x128xf32>
    %c0_12 = arith.constant 0 : index
    %c0_13 = arith.constant 0 : index
    %24 = vector.load %arg1[%c0_12, %c0_13] : memref<8x128xbf16, #tpu.memory_space<vmem>>, vector<8x128xbf16>
    %25 = arith.truncf %23 : vector<128x128xf32> to vector<128x128xbf16>
    %cst_14 = arith.constant dense<0.000000e+00> : vector<8x128xf32>
    %26 = tpu.matmul %24, %25, %cst_14 {dimension_numbers = #tpu.dot_dimension_numbers<[1], [1], [0], [0], [0, 0, 1, 0], [], []>} : vector<8x128xbf16>, vector<128x128xbf16>, vector<8x128xf32> -> vector<8x128xf32>
    %c0_15 = arith.constant 0 : index
    %c0_16 = arith.constant 0 : index
    %27 = vector.load %arg7[%c0_15, %c0_16] : memref<1x128xf32, #tpu.memory_space<vmem>>, vector<1x128xf32>
    %28 = vector.broadcast %27 : vector<1x128xf32> to vector<8x128xf32>
    %29 = arith.addf %26, %28 : vector<8x128xf32>
    %30 = arith.negf %29 : vector<8x128xf32>
    %31 = math.exp %30 : vector<8x128xf32>
    %cst_17 = arith.constant 1.000000e+00 : f32
    %32 = vector.broadcast %cst_17 : f32 to vector<8x128xf32>
    %33 = arith.addf %32, %31 : vector<8x128xf32>
    %34 = arith.divf %32, %33 : vector<8x128xf32>
    %c0_18 = arith.constant 0 : index
    %c0_19 = arith.constant 0 : index
    %35 = vector.load %arg8[%c0_18, %c0_19] : memref<8x128xf32, #tpu.memory_space<vmem>>, vector<8x128xf32>
    tpu.vector_store %arg8[%c0_18, %c0_19], %34 {strides = array<i32>} : memref<8x128xf32, #tpu.memory_space<vmem>>, vector<8x128xf32>,
    return
  }
  func.func @transform_0(%arg0: i32) -> (i32, i32) {
    %c0_i32 = arith.constant 0 : i32
    %c0_i32_0 = arith.constant 0 : i32
    %c0_i32_1 = arith.constant 0 : i32
    return %c0_i32, %c0_i32_0 : i32, i32
  }
  func.func @transform_1(%arg0: i32) -> (i32, i32) {
    %c0_i32 = arith.constant 0 : i32
    %c0_i32_0 = arith.constant 0 : i32
    return %arg0, %c0_i32 : i32, i32
  }
  func.func @transform_2(%arg0: i32) -> (i32, i32) {
    %c0_i32 = arith.constant 0 : i32
    %c0_i32_0 = arith.constant 0 : i32
    return %arg0, %c0_i32 : i32, i32
  }
  func.func @transform_3(%arg0: i32) -> (i32, i32) {
    %c0_i32 = arith.constant 0 : i32
    %c0_i32_0 = arith.constant 0 : i32
    %c0_i32_1 = arith.constant 0 : i32
    return %c0_i32, %c0_i32_0 : i32, i32
  }
  func.func @transform_4(%arg0: i32) -> (i32, i32) {
    %c0_i32 = arith.constant 0 : i32
    %c0_i32_0 = arith.constant 0 : i32
    %c0_i32_1 = arith.constant 0 : i32
    return %c0_i32, %c0_i32_0 : i32, i32
  }
  func.func @transform_5(%arg0: i32) -> (i32, i32) {
    %c0_i32 = arith.constant 0 : i32
    %c0_i32_0 = arith.constant 0 : i32
    %c0_i32_1 = arith.constant 0 : i32
    return %c0_i32, %c0_i32_0 : i32, i32
  }
  func.func @transform_6(%arg0: i32) -> (i32, i32) {
    %c0_i32 = arith.constant 0 : i32
    %c0_i32_0 = arith.constant 0 : i32
    return %c0_i32, %arg0 : i32, i32
  }
  func.func @transform_7(%arg0: i32) -> (i32, i32) {
    %c0_i32 = arith.constant 0 : i32
    %c0_i32_0 = arith.constant 0 : i32
    return %c0_i32, %arg0 : i32, i32
  }
}

</mosaic_0001>

<bundles_post_ra>
// kernel: distmult_literal_gate_forward.1
= control target key start
LH: loop header
LB: loop body
LE: loop exit
PB: predicated region body
PF: predicated region fallthrough
CT: control target
= control target key end

     0   :  { %12 = vsyncpa [#allocation3], 0  ;;  %s1999_s0 = inlined_call_operand.vmem [shape: bf16[8,128], index: 0, kind: input, shape index: {}]   ;;  %s2000_s1 = inlined_call_operand.vmem [shape: bf16[512,128], index: 1, kind: input, shape index: {}]   ;;  %s2001_s2 = inlined_call_operand.vmem [shape: bf16[512,16], index: 2, kind: input, shape index: {}]   ;;  %s2002_s3 = inlined_call_operand.vmem [shape: bf16[128,256], index: 3, kind: input, shape index: {}]   ;;  %s2003_s4 = inlined_call_operand.vmem [shape: bf16[16,256], index: 4, kind: input, shape index: {}]   ;;  %s2004_s5 = inlined_call_operand.vmem [shape: f32[1,256], index: 5, kind: input, shape index: {}]   ;;  %s2005_s6 = inlined_call_operand.vmem [shape: f32[1,512], index: 6, kind: input, shape index: {}]   ;;  %s2006_s7 = inlined_call_operand.hbm [shape: f32[8,512], index: 7, kind: output, shape index: {}]  }
   0x1   :  { %14 = vsyncpa [#allocation3 + $0x1], 0  ;;  %s1589_s24 = smov 0   ;;  %s1591_s25 = smov 0  }
   0x2   :  { %s1593_s26 = smov 0   ;;  %s1595_s27 = smov 0  }
   0x3 LB: > { %s1610_s28 = sadd.s32 4294967295, %s1543_s27   ;;  %s1188_s29 = sadd.s32 4294967294, %s1543_s27   ;;  %s1543_s27 = sphi %s1595_s27, %s2012_s27   ;;  %s1539_s26 = sphi %s1593_s26, %s2011_s26   ;;  %s1535_s25 = sphi %s1591_s25, %s2010_s25   ;;  %s1531_s24 = sphi %s1589_s24, %s2009_s24  }
   0x4   : > { %s1614_s30 = sadd.s32 1, %s1543_s27   ;;  %s189_s8 = sadd.s32 1, %s1539_s26 }
   0x5   : > { %s186_s9 = ssub.s32 %s1543_s27, %s1614_s30  ;;  %p199_p0 = scmp.ne.s32.totalorder %s1539_s26, %s1535_s25 }
   0x6   : > { %p187_p1 = scmp.eq.s32.totalorder %s186_s9, 0  ;;  %p200_p2 = scmp.eq.s32.totalorder %s1610_s28, 3 }
   0x7   : > { %p205_p3 = scmp.ne.s32.totalorder %s1535_s25, %s1531_s24  ;;  %p206_p4 = scmp.eq.s32.totalorder %s1188_s29, 3 }
   0x8   : > { %s1625_s10 = scalar_select %p187_p1, %s1539_s26, %s189_s8  }
   0x9   : > { %p1627_p5 = por %p200_p2, %p199_p0  ;;  %p1631_p6 = por %p206_p4, %p205_p3 }
   0xa   : > { %p1191_p7 = scmp.ge.s32.totalorder %s1543_s27, 1  ;;  %p260_p8 = scmp.lt.s32.totalorder %s1543_s27, 5 }
   0xc   : > { %p261_p9 = pnand %p1191_p7, %p260_p8 }
   0xd   : > { %s1193_s15 = sshll.u32 (!%p261_p9), %s1610_s28, 4  ;;  %p312_p11 = scmp.lt.s32.totalorder (!%p261_p9), %s1610_s28, 3 }
   0xe   : > { %264 = sbr.rel (%p261_p9) target bundleno = 655 (0x28f), region = 48  ;;  %p301_p10 = scmp.lt.s32.totalorder (!%p261_p9), %s1193_s15, 63 }
   0xf   : > { %s297_s14 = sand.u32 (!%p261_p9), 1, %s1535_s25   ;;  %s1258_s17 = sshll.u32 (!%p261_p9), %s1610_s28, 7 }
  0x10   : > { %s1192_s16 = sshll.u32 (!%p261_p9), %s297_s14, 3 }
  0x13   : > { %v1332_v0 = vld [vmem:[%s2002_s3 + $0x74] ss:$8 sps:$4 sm:$0xff]   ;;  %v1334_v1 = vld [vmem:[%s2002_s3 + $0x70] ss:$8 sps:$4 sm:$0xff]   ;;  %v1545_v2 = vmov 0   ;;  %s2014_s15 = smov (!%p301_p10, %s1193_s15), 63  ;;  %v797_v42 = vlaneseq }
  0x14   : > { %473 = vmatprep.mubr.bf16.mxu0 %v1545_v2  ;;  %714 = vmatprep.mubr.bf16.mxu1 %v1545_v2  ;;  %v1335_v3 = vld [vmem:[%s2002_s3 + $0x64] ss:$8 sps:$4 sm:$0xff]   ;;  %v1337_v4 = vld [vmem:[%s2002_s3 + $0x60] ss:$8 sps:$4 sm:$0xff]   ;;  %v1338_v5 = vld [vmem:[%s2002_s3 + $0x54] ss:$8 sps:$4 sm:$0xff]  }
  0x15   : > { %682 = vmatprep.subr.bf16.mxu1 %v1332_v0  ;;  %s1194_s29 = sshll.u32 %s2014_s15, 2  ;;  %v1340_v6 = vld [vmem:[%s2002_s3 + $0x50] ss:$8 sps:$4 sm:$0xff]   ;;  %v1341_v7 = vld [vmem:[%s2002_s3 + $0x44] ss:$8 sps:$4 sm:$0xff]   ;;  %vm416_vm0 = vcmask 130048  }
  0x16   : > { %683 = vmatpush1.bf16.msra.mxu1 %v1334_v1  ;;  %v1350_v8 = vld [vmem:[%s2003_s4 + $0x4] ss:$8 sps:$4 sm:$0xff]   ;;  %s1672_s20 = scalar_lea.vmem %s2001_s2, %s1194_s29  ;;  %v1352_v9 = vld [vmem:[%s2003_s4] ss:$8 sps:$4 sm:$0xff]   ;;  %v1344_v12 = vld [vmem:[%s2002_s3 + $0x34] ss:$8 sps:$4 sm:$0xff]   ;;  %s1712_s18 = scalar_lea.vmem %s2000_s1, %s1194_s29 }
  0x17   : > { %684 = vmatprep.subr.bf16.mxu1 %v1335_v3  ;;  %v1343_v10 = vld [vmem:[%s2002_s3 + $0x40] ss:$8 sps:$4 sm:$0xff]   ;;  %455 = vmatprep.subr.bf16.mxu0 %v1350_v8  ;;  %v1346_v13 = vld [vmem:[%s2002_s3 + $0x30] ss:$8 sps:$4 sm:$0xff]   ;;  %v1347_v14 = vld [vmem:[%s2002_s3 + $0x24] ss:$8 sps:$4 sm:$0xff]   ;;  %s1964_s29 = scalar_lea.hbm %s2006_s7, %s1258_s17 }
  0x18   : > { %456 = vmatpush1.bf16.msra.mxu0 %v1352_v9  ;;  %v1356_v11 = vld [vmem:[%s1672_s20] sm:$0xff]   ;;  %v1361_v15 = vld [vmem:[%s1672_s20 + $0x8] sm:$0xff]   ;;  %v1353_v17 = vld [vmem:[%s2002_s3 + $0x14] ss:$8 sps:$4 sm:$0xff]   ;;  %v1546_v35 = vmov 0.0   ;;  %v798_v45 = vshrl.u32 %v797_v42, 7 }
  0x19   : > { %v1349_v16 = vld [vmem:[%s2002_s3 + $0x20] ss:$8 sps:$4 sm:$0xff]   ;;  %v1355_v18 = vld [vmem:[%s2002_s3 + $0x10] ss:$8 sps:$4 sm:$0xff]   ;;  %v1357_v19 = vld [vmem:[%s2002_s3 + $0x4] ss:$8 sps:$4 sm:$0xff]   ;;  %1270 = vmatprep.subr.bf16.mxu0 %v1546_v35 }
  0x1a   : > { %685 = vmatpush1.bf16.msra.mxu1 %v1337_v4  ;;  %v1363_v20 = vld [vmem:[%s1672_s20 + $0x10] sm:$0xff]   ;;  %v1359_v21 = vld [vmem:[%s2002_s3] ss:$8 sps:$4 sm:$0xff]   ;;  %v1365_v23 = vld [vmem:[%s1672_s20 + $0x18] sm:$0xff]   ;;  %v803_v47 = vsub.s32 1, %v798_v45  ;;  %v799_v9 = vsub.s32 0, %v798_v45 }
  0x1b   : > { %686 = vmatprep.subr.bf16.mxu1 %v1338_v5  ;;  %1207 = vmatmul.mubr.msk.bf16.vlgmr.msra.gmra.mxu0 %vm416_vm0, %v1356_v11  ;;  %v1719_v22 = vld [vmem:[%s1712_s18] sm:$0xff]   ;;  %v1727_v24 = vld [vmem:[%s1712_s18 + $0x8] sm:$0xff]   ;;  %v1735_v26 = vld [vmem:[%s1712_s18 + $0x10] sm:$0xff]   ;;  %vm1547_vm1 = vmmov 0   ;;  %s313_s23 = scalar_select %p312_p11, %s1610_s28, 3 }
  0x1c   : > { %483 = vmatprep.mubr.bf16.mxu0 %v1545_v2  ;;  %v1367_v25 = vld [vmem:[%s1672_s20 + $0x20] sm:$0xff]   ;;  %v1369_v27 = vld [vmem:[%s1672_s20 + $0x28] sm:$0xff]   ;;  %v1743_v28 = vld [vmem:[%s1712_s18 + $0x18] sm:$0xff]  }
  0x1d   : > { %v1371_v29 = vld [vmem:[%s1672_s20 + $0x30] sm:$0xff]   ;;  %v1751_v30 = vld [vmem:[%s1712_s18 + $0x20] sm:$0xff]   ;;  %v1373_v31 = vld [vmem:[%s1672_s20 + $0x38] sm:$0xff]   ;;  %s314_s13 = scalar_lea.vmem %s2005_s6, %s313_s23  ;;  %s1095_s20 = scalar_lea.sflag [#allocation3], %s297_s14 }
  0x1e   : > { %687 = vmatpush1.bf16.msra.mxu1 %v1340_v6  ;;  %v1759_v32 = vld [vmem:[%s1712_s18 + $0x28] sm:$0xff]   ;;  %v1765_v33 = vld [vmem:[%s1712_s18 + $0x30] sm:$0xff]   ;;  %v1770_v34 = vld [vmem:[%s1712_s18 + $0x38] sm:$0xff]   ;;  %s299_s18 = scalar_lea.vmem [#allocation2], %s1192_s16  ;;  %s1548_s23 = smov [#allocation2]  }
  0x1f   : > { %688 = vmatprep.subr.bf16.mxu1 %v1341_v7  ;;  %v795_v50 = vld [vmem:[%s2004_s5] sm:$0x3]  ;;  %s1108_s19 = sshll.u32 %s299_s18, 4  ;;  %s1487_s8 = sshll.u32 %s1548_s23, 4  ;;  %s1109_s19 = int_to_ptr.vmem [resolvable:$true] %s1108_s19  ;;  %s1488_s8 = int_to_ptr.vmem [resolvable:$false] %s1487_s8 }
  0x20   : > { %v1777_v53 = vrot.slane %v795_v50, %v803_v47  ;;  %s1483_s22 = scalar_lea.vmem %s1109_s19, 128  ;;  %s1489_s28 = scalar_lea.vmem %s1488_s8, 256 }
  0x21   : > { %p1484_p12 = scmp.ne.s32.totalorder %s1109_s19, %s1483_s22  ;;  %p1490_p1 = scmp.lt.s32.totalorder %s1109_s19, %s1488_s8 }
  0x22   : > { %689 = vmatpush1.bf16.msra.mxu1 %v1343_v10  ;;  %p1491_p2 = scmp.lt.s32.totalorder %s1489_s28, %s1483_s22 }
  0x23   : > { %690 = vmatprep.subr.bf16.mxu1 %v1344_v12  ;;  %1208 = vmatmul.mubr.msk.bf16.gmra.mxu0 %vm416_vm0, %v1361_v15  ;;  %p1485_p13 = pnand %p1484_p12, %p1627_p5 }
  0x24   : > { %493 = vmatprep.mubr.bf16.mxu0 %v1545_v2  ;;  %p1492_p3 = por %p1491_p2, %p1490_p1 }
  0x25   : > { %p1486_p0 = pneg %p1485_p13 }
  0x26   : > { %691 = vmatpush1.bf16.msra.mxu1 %v1346_v13 }
  0x27   : > { %692 = vmatprep.subr.bf16.mxu1 %v1347_v14  ;;  %p1493_p4 = pnand %p1492_p3, %p1486_p0 }
  0x2a   : > { %693 = vmatpush1.bf16.msra.mxu1 %v1349_v16 }
  0x2b   : > { %694 = vmatprep.subr.bf16.mxu1 %v1353_v17  ;;  %1209 = vmatmul.mubr.msk.bf16.gmra.mxu0 %vm416_vm0, %v1363_v20 }
  0x2c   : > { %503 = vmatprep.mubr.bf16.mxu0 %v1545_v2 }
  0x2e   : > { %695 = vmatpush1.bf16.msra.mxu1 %v1355_v18  ;;  %v1784_v18 = vrot.slane %v795_v50, %v799_v9 }
  0x2f   : > { %696 = vmatprep.subr.bf16.mxu1 %v1357_v19 }
  0x32   : > { %697 = vmatpush1.bf16.msra.mxu1 %v1359_v21 }
  0x33   : > { %1210 = vmatmul.mubr.msk.bf16.gmra.mxu0 %vm416_vm0, %v1365_v23 }
  0x34   : > { %513 = vmatprep.mubr.bf16.mxu0 %v1545_v2 }
  0x35   : > { %715 = vmatmul.mubr.bf16.vlgmr.msra.gmra.mxu1 %v1719_v22 }
  0x36   : > { %724 = vmatprep.mubr.bf16.mxu1 %v1545_v2 }
  0x3b   : > { %1211 = vmatmul.mubr.msk.bf16.gmra.mxu0 %vm416_vm0, %v1367_v25 }
  0x3c   : > { %523 = vmatprep.mubr.bf16.mxu0 %v1545_v2 }
  0x3d   : > { %725 = vmatmul.mubr.bf16.gmra.mxu1 %v1727_v24 }
  0x3e   : > { %734 = vmatprep.mubr.bf16.mxu1 %v1545_v2 }
  0x43   : > { %1212 = vmatmul.mubr.msk.bf16.gmra.mxu0 %vm416_vm0, %v1369_v27 }
  0x44   : > { %533 = vmatprep.mubr.bf16.mxu0 %v1545_v2 }
  0x45   : > { %735 = vmatmul.mubr.bf16.gmra.mxu1 %v1735_v26 }
  0x46   : > { %744 = vmatprep.mubr.bf16.mxu1 %v1545_v2 }
  0x4b   : > { %1213 = vmatmul.mubr.msk.bf16.gmra.mxu0 %vm416_vm0, %v1371_v29 }
  0x4c   : > { %543 = vmatprep.mubr.bf16.mxu0 %v1545_v2 }
  0x4d   : > { %745 = vmatmul.mubr.bf16.gmra.mxu1 %v1743_v28 }
  0x4e   : > { %754 = vmatprep.mubr.bf16.mxu1 %v1545_v2 }
  0x53   : > { %1214 = vmatmul.mubr.msk.bf16.gmra.mxu0 %vm416_vm0, %v1373_v31 }
  0x54   : > { %1286 = vmatprep.mubr.msk.bf16.mxu0 %vm1547_vm1, %v1546_v35 }
  0x55   : > { %755 = vmatmul.mubr.bf16.gmra.mxu1 %v1751_v30 }
  0x56   : > { %764 = vmatprep.mubr.bf16.mxu1 %v1545_v2 }
  0x5d   : > { %765 = vmatmul.mubr.bf16.gmra.mxu1 %v1759_v32 }
  0x5e   : > { %774 = vmatprep.mubr.bf16.mxu1 %v1545_v2 }
  0x65   : > { %775 = vmatmul.mubr.bf16.gmra.mxu1 %v1765_v33 }
  0x66   : > { %784 = vmatprep.mubr.bf16.mxu1 %v1545_v2 }
  0x6d   : > { %785 = vmatmul.mubr.bf16.gmra.mxu1 %v1770_v34 }
  0xdb   : > { %v475_v36 = vpop.f32.mrf.mxu0 }
  0xdd   : > { %v477_v37 = vpop.f32.mrf.mxu0 }
  0xdf   : > { %v479_v38 = vpop.f32.mrf.mxu0 }
  0xe1   : > { %v481_v39 = vpop.f32.mrf.mxu0 }
  0xe3   : > { %v485_v40 = vpop.f32.mrf.mxu0 }
  0xe5   : > { %v487_v41 = vpop.f32.mrf.mxu0 }
  0xe7   : > { %v489_v43 = vpop.f32.mrf.mxu0 }
  0xe9   : > { %v491_v44 = vpop.f32.mrf.mxu0 }
  0xeb   : > { %v495_v46 = vpop.f32.mrf.mxu0 }
  0xed   : > { %v497_v48 = vpop.f32.mrf.mxu0 }
  0xef   : > { %v499_v51 = vpop.f32.mrf.mxu0 }
  0xf1   : > { %v501_v55 = vpop.f32.mrf.mxu0 }
  0xf3   : > { %v505_v58 = vpop.f32.mrf.mxu0 }
  0xf5   : > { %v716_v49 = vpop.f32.mrf.mxu1  ;;  %v507_v62 = vpop.f32.mrf.mxu0 }
  0xf6   : > { %v717_v52 = vadd.f32 %v716_v49, %v475_v36 }
  0xf7   : > { %v718_v54 = vpop.f32.mrf.mxu1  ;;  %v509_v2 = vpop.f32.mrf.mxu0 }
  0xf8   : > { %v719_v56 = vadd.f32 %v718_v54, %v477_v37  ;;  %v807_v36 = vadd.f32 %v1784_v18, %v717_v52 }
  0xf9   : > { %v720_v57 = vpop.f32.mrf.mxu1  ;;  %v511_v6 = vpop.f32.mrf.mxu0 }
  0xfa   : > { %v808_v59 = vadd.f32 %v1777_v53, %v719_v56  ;;  %v721_v60 = vadd.f32 %v720_v57, %v479_v38 }
  0xfb   : > { %v722_v61 = vpop.f32.mrf.mxu1  ;;  %v515_v11 = vpop.f32.mrf.mxu0 }
  0xfc   : > { %v1239_v63 = vmul.f32 -1.442695, %v808_v59  ;;  %v723_v0 = vadd.f32 %v722_v61, %v481_v39  ;;  %v809_v47 = vadd.f32 %v1784_v18, %v721_v60 }
  0xfd   : > { %v726_v1 = vpop.f32.mrf.mxu1  ;;  %v1782_v15 = vpop.f32.mrf.mxu0 }
  0xfe   : > { %1383 = vpow2.f32 %v1239_v63  ;;  %v810_v3 = vadd.f32 %v1777_v53, %v723_v0  ;;  %v727_v4 = vadd.f32 %v726_v1, %v485_v40 }
  0xff   : > { %v728_v5 = vpop.f32.mrf.mxu1  ;;  %v1786_v20 = vpop.f32.mrf.mxu0 }
 0x100   : > { %v1240_v7 = vmul.f32 -1.442695, %v810_v3  ;;  %v729_v8 = vadd.f32 %v728_v5, %v487_v41  ;;  %v811_v59 = vadd.f32 %v1784_v18, %v727_v4 }
 0x101   : > { %v730_v10 = vpop.f32.mrf.mxu1  ;;  %v1789_v27 = vpop.f32.mrf.mxu0 }
 0x102   : > { %1385 = vpow2.f32 %v1240_v7  ;;  %v812_v12 = vadd.f32 %v1777_v53, %v729_v8  ;;  %v731_v13 = vadd.f32 %v730_v10, %v489_v43 }
 0x103   : > { %v732_v14 = vpop.f32.mrf.mxu1  ;;  %v1792_v38 = vpop.f32.mrf.mxu0 }
 0x104   : > { %v1241_v16 = vmul.f32 -1.442695, %v812_v12  ;;  %v733_v17 = vadd.f32 %v732_v14, %v491_v44  ;;  %v813_v7 = vadd.f32 %v1784_v18, %v731_v13 }
 0x105   : > { %v736_v19 = vpop.f32.mrf.mxu1  ;;  %v1795_v43 = vpop.f32.mrf.mxu0 }
 0x106   : > { %1387 = vpow2.f32 %v1241_v16  ;;  %v814_v21 = vadd.f32 %v1777_v53, %v733_v17  ;;  %v737_v23 = vadd.f32 %v736_v19, %v495_v46 }
 0x107   : > { %v738_v25 = vpop.f32.mrf.mxu1 }
 0x108   : > { %v1242_v29 = vmul.f32 -1.442695, %v814_v21  ;;  %v739_v31 = vadd.f32 %v738_v25, %v497_v48  ;;  %v951_v21 = vunpack.c.l.bf16 %v1719_v22 }
 0x109   : > { %v740_v37 = vpop.f32.mrf.mxu1 }
 0x10a   : > { %1389 = vpow2.f32 %v1242_v29  ;;  %v816_v39 = vadd.f32 %v1777_v53, %v739_v31  ;;  %v741_v40 = vadd.f32 %v740_v37, %v499_v51  ;;  %v1801_v51 = vpop.f32.mrf.mxu0 }
 0x10b   : > { %v1384_v41 = vpop.eup %1383  ;;  %v742_v42 = vpop.f32.mrf.mxu1  ;;  %1391 = vtanh.f32 %v807_v36 }
 0x10c   : > { %v903_v44 = vadd.f32 1.0, %v1384_v41  ;;  %v1243_v45 = vmul.f32 -1.442695, %v816_v39  ;;  %v743_v46 = vadd.f32 %v742_v42, %v501_v55  ;;  %v1807_v1 = vpop.f32.mrf.mxu0 }
 0x10d   : > { %v746_v48 = vpop.f32.mrf.mxu1 }
 0x10e   : > { %1393 = vrcp.f32 %v903_v44  ;;  %v818_v49 = vadd.f32 %v1777_v53, %v743_v46  ;;  %v1799_v50 = vadd.f32 %v746_v48, %v505_v58  ;;  %v1813_v12 = vpop.f32.mrf.mxu0  ;;  %v952_v48 = vunpack.c.h.bf16 %v1719_v22 }
 0x10f   : > { %v1386_v52 = vpop.eup %1385  ;;  %1395 = vpow2.f32 %v1243_v45  ;;  %v748_v54 = vpop.f32.mrf.mxu1 }
 0x110   : > { %v904_v56 = vadd.f32 1.0, %v1386_v52  ;;  %v1244_v57 = vmul.f32 -1.442695, %v818_v49  ;;  %1397 = vtanh.f32 %v809_v47  ;;  %v749_v55 = vadd.f32 %v748_v54, %v507_v62  ;;  %v1824_v36 = vpop.f32.mrf.mxu0 }
 0x111   : > { %v750_v61 = vpop.f32.mrf.mxu1 }
 0x112   : > { %1399 = vrcp.f32 %v904_v56  ;;  %v1804_v60 = vadd.f32 %v750_v61, %v509_v2  ;;  %v820_v58 = vadd.f32 %v1777_v53, %v749_v55  ;;  %v1833_v52 = vpop.f32.mrf.mxu0 }
 0x113   : > { %v1388_v63 = vpop.eup %1387  ;;  %1401 = vpow2.f32 %v1244_v57  ;;  %v752_v0 = vpop.f32.mrf.mxu1 }
 0x114   : > { %v905_v3 = vadd.f32 1.0, %v1388_v63  ;;  %v753_v5 = vadd.f32 %v752_v0, %v511_v6  ;;  %1403 = vtanh.f32 %v811_v59  ;;  %v1245_v8 = vmul.f32 -1.442695, %v820_v58 }
 0x115   : > { %v756_v9 = vpop.f32.mrf.mxu1  ;;  %v815_v6 = vadd.f32 %v1784_v18, %v737_v23  ;;  %v819_v58 = vadd.f32 %v1784_v18, %v1799_v50  ;;  %v953_v0 = vunpack.c.l.bf16 %v1727_v24  ;;  %v821_v50 = vadd.f32 %v1784_v18, %v1804_v60 }
 0x116   : > { %1405 = vrcp.f32 %v905_v3  ;;  %v822_v62 = vadd.f32 %v1777_v53, %v753_v5  ;;  %v1811_v4 = vadd.f32 %v756_v9, %v515_v11  ;;  %v817_v11 = vadd.f32 %v1784_v18, %v741_v40  ;;  %v541_v5 = vpop.f32.mrf.mxu0 }
 0x117   : > { %v1390_v2 = vpop.eup %1389  ;;  %1407 = vpow2.f32 %v1245_v8  ;;  %v758_v10 = vpop.f32.mrf.mxu1 }
 0x118   : > { %v906_v14 = vadd.f32 1.0, %v1390_v2  ;;  %v1246_v16 = vmul.f32 -1.442695, %v822_v62  ;;  %1409 = vtanh.f32 %v813_v7  ;;  %v759_v17 = vadd.f32 %v758_v10, %v1782_v15  ;;  %v1392_v19 = vpop.eup %1391 }
 0x119   : > { %v760_v13 = vpop.f32.mrf.mxu1 }
 0x11a   : > { %1411 = vrcp.f32 %v906_v14  ;;  %v1820_v25 = vadd.f32 %v760_v13, %v1786_v20  ;;  %v824_v31 = vadd.f32 %v1777_v53, %v759_v17  ;;  %v954_v17 = vunpack.c.h.bf16 %v1727_v24  ;;  %v1851_v13 = vpop.f32.mrf.mxu0 }
 0x11b   : > { %v1394_v29 = vpop.eup %1393  ;;  %1413 = vpow2.f32 %v1246_v16  ;;  %v762_v23 = vpop.f32.mrf.mxu1  ;;  %v955_v24 = vunpack.c.l.bf16 %v1735_v26 }
 0x11c   : > { %v1396_v15 = vpop.eup %1395  ;;  %v763_v37 = vadd.f32 %v762_v23, %v1789_v27  ;;  %v967_v39 = vsub.f32 1.0, %v1394_v29  ;;  %1415 = vtanh.f32 %v815_v6  ;;  %v1247_v40 = vmul.f32 -1.442695, %v824_v31 }
 0x11d   : > { %v907_v41 = vadd.f32 1.0, %v1396_v15  ;;  %v1827_v42 = vpop.f32.mrf.mxu1  ;;  %v999_v20 = vmul.f32 %v1394_v29, %v1392_v19  ;;  %v1398_v44 = vpop.eup %1397  ;;  %1417 = vtanh.f32 %v817_v11 }
 0x11e   : > { %v826_v45 = vadd.f32 %v1777_v53, %v763_v37  ;;  %v983_v46 = vmul.f32 %v967_v39, %v951_v21 }
 0x11f   : > { %v1400_v47 = vpop.eup %1399  ;;  %1419 = vrcp.f32 %v907_v41  ;;  %v1831_v49 = vpop.f32.mrf.mxu1 }
 0x120   : > { %v1402_v27 = vpop.eup %1401  ;;  %1421 = vpow2.f32 %v1247_v40  ;;  %v1248_v54 = vmul.f32 -1.442695, %v826_v45  ;;  %v968_v59 = vsub.f32 1.0, %v1400_v47  ;;  %v1000_v55 = vmul.f32 %v1400_v47, %v1398_v44 }
 0x121   : > { %v908_v56 = vadd.f32 1.0, %v1402_v27  ;;  %v1835_v57 = vpop.f32.mrf.mxu1  ;;  %v1837_v61 = vadd.f32 %v999_v20, %v983_v46  ;;  %v1404_v63 = vpop.eup %1403  ;;  %v823_v40 = vadd.f32 %v1784_v18, %v1811_v4  ;;  %v956_v4 = vunpack.c.h.bf16 %v1735_v26 }
 0x122   : > { %1423 = vpow2.f32 %v1248_v54  ;;  %v984_v7 = vmul.f32 %v968_v59, %v952_v48  ;;  %v547_v20 = vpop.f32.mrf.mxu0 }
 0x123   : > { %v1406_v22 = vpop.eup %1405  ;;  %1425 = vrcp.f32 %v908_v56  ;;  %v1842_v3 = vpop.f32.mrf.mxu1 }
 0x124   : > { %v1408_v8 = vpop.eup %1407  ;;  %v969_v2 = vsub.f32 1.0, %v1406_v22  ;;  %v1001_v10 = vmul.f32 %v1406_v22, %v1404_v63  ;;  %v1846_v14 = vadd.f32 %v1000_v55, %v984_v7  ;;  %1427 = vtanh.f32 %v819_v58 }
 0x125   : > { %v909_v9 = vadd.f32 1.0, %v1408_v8  ;;  %v1844_v62 = vpop.f32.mrf.mxu1  ;;  %v1410_v16 = vpop.eup %1409 }
 0x126   : > { %v985_v21 = vmul.f32 %v969_v2, %v953_v0  ;;  %v1032_v11 = vpack.c.bf16 %v1846_v14, %v1837_v61  ;;  %v1869_v0 = vpop.f32.mrf.mxu0 }
 0x127   : > { %v1412_v6 = vpop.eup %1411  ;;  %1429 = vrcp.f32 %v909_v9  ;;  %v778_v19 = vpop.f32.mrf.mxu1  ;;  %v825_v9 = vadd.f32 %v1784_v18, %v1820_v25 }
 0x128   : > { %v1414_v29 = vpop.eup %1413  ;;  %v970_v15 = vsub.f32 1.0, %v1412_v6  ;;  %v1002_v37 = vmul.f32 %v1412_v6, %v1410_v16  ;;  %v1857_v39 = vadd.f32 %v1001_v10, %v985_v21  ;;  %1431 = vtanh.f32 %v821_v50 }
 0x129   : > { %v910_v31 = vadd.f32 1.0, %v1414_v29  ;;  %v1855_v23 = vpop.f32.mrf.mxu1  ;;  %v1416_v60 = vpop.eup %1415  ;;  %v779_v47 = vadd.f32 %v778_v19, %v1824_v36  ;;  %v957_v29 = vunpack.c.l.bf16 %v1743_v28 }
 0x12a   : > { %v1418_v41 = vpop.eup %1417  ;;  %v986_v45 = vmul.f32 %v970_v15, %v954_v17  ;;  %v551_v15 = vpop.f32.mrf.mxu0 }
 0x12b   : > { %1433 = vrcp.f32 %v910_v31  ;;  %v782_v44 = vpop.f32.mrf.mxu1  ;;  %v832_v10 = vadd.f32 %v1777_v53, %v779_v47  ;;  %v773_v31 = vadd.f32 %v1842_v3, %v1807_v1 }
 0x12c   : > { %v1420_v46 = vpop.eup %1419  ;;  %v783_v48 = vadd.f32 %v782_v44, %v541_v5  ;;  %v1865_v55 = vadd.f32 %v1002_v37, %v986_v45  ;;  %1435 = vtanh.f32 %v823_v40 }
 0x12d   : > { %v1422_v27 = vpop.eup %1421  ;;  %v1863_v54 = vpop.f32.mrf.mxu1  ;;  %v971_v56 = vsub.f32 1.0, %v1420_v46  ;;  %v1003_v59 = vmul.f32 %v1420_v46, %v1416_v60  ;;  %v1251_v40 = vmul.f32 -1.442695, %v832_v10 }
 0x12e   : > { %v911_v63 = vadd.f32 1.0, %v1422_v27  ;;  %v834_v58 = vadd.f32 %v1777_v53, %v783_v48  ;;  %v1033_v36 = vpack.c.bf16 %v1865_v55, %v1857_v39  ;;  %v958_v48 = vunpack.c.h.bf16 %v1743_v28  ;;  %v1255_v39 = vld [vmem:[%s314_s13] ss:$0 sm:$0xff] }
 0x12f   : > { %v1424_v22 = vpop.eup %1423  ;;  %v788_v7 = vpop.f32.mrf.mxu1  ;;  %v987_v8 = vmul.f32 %v971_v56, %v955_v24  ;;  %v830_v27 = vadd.f32 %v1777_v53, %v773_v31 }
 0x130   : > { %v1426_v5 = vpop.eup %1425  ;;  %1437 = vrcp.f32 %v911_v63  ;;  %v912_v2 = vadd.f32 1.0, %v1424_v22  ;;  %v789_v16 = vadd.f32 %v788_v7, %v547_v20  ;;  %v1252_v19 = vmul.f32 -1.442695, %v834_v58 }
 0x131   : > { %v790_v50 = vpop.f32.mrf.mxu1  ;;  %v972_v6 = vsub.f32 1.0, %v1426_v5  ;;  %v1004_v26 = vmul.f32 %v1426_v5, %v1418_v41  ;;  %v1876_v17 = vadd.f32 %v1003_v59, %v987_v8  ;;  %v1428_v21 = vpop.eup %1427  ;;  %v769_v41 = vadd.f32 %v1831_v49, %v1795_v43 }
 0x132   : > { %1439 = vrcp.f32 %v912_v2  ;;  %v836_v25 = vadd.f32 %v1777_v53, %v789_v16  ;;  %v1250_v28 = vmul.f32 -1.442695, %v830_v27  ;;  %v959_v5 = vunpack.c.l.bf16 %v1751_v30 }
 0x133   : > { %v792_v37 = vpop.f32.mrf.mxu1  ;;  %v988_v60 = vmul.f32 %v972_v6, %v956_v4  ;;  %1441 = vtanh.f32 %v825_v9  ;;  %v828_v59 = vadd.f32 %v1777_v53, %v769_v41  ;;  %v960_v16 = vunpack.c.h.bf16 %v1751_v30 }
 0x134   : > { %v1430_v24 = vpop.eup %1429  ;;  %v793_v20 = vadd.f32 %v792_v37, %v551_v15  ;;  %v1253_v44 = vmul.f32 -1.442695, %v836_v25  ;;  %1443 = vpow2.f32 %v1252_v19  ;;  %v787_v15 = vadd.f32 %v1863_v54, %v1851_v13 }
 0x135   : > { %v973_v45 = vsub.f32 1.0, %v1430_v24  ;;  %v1005_v46 = vmul.f32 %v1430_v24, %v1428_v21  ;;  %v1884_v47 = vadd.f32 %v1004_v26, %v988_v60  ;;  %v1432_v3 = vpop.eup %1431  ;;  %v1249_v2 = vmul.f32 -1.442695, %v828_v59 }
 0x136   : > { %v838_v1 = vadd.f32 %v1777_v53, %v793_v20  ;;  %1445 = vpow2.f32 %v1253_v44  ;;  %v791_v41 = vadd.f32 %v790_v50, %v1869_v0  ;;  %v835_v20 = vadd.f32 %v1784_v18, %v787_v15 }
 0x137   : > { %v989_v56 = vmul.f32 %v973_v45, %v957_v29  ;;  %v1034_v43 = vpack.c.bf16 %v1884_v47, %v1876_v17  ;;  %1447 = vpow2.f32 %v1251_v40  ;;  %v781_v0 = vadd.f32 %v1855_v23, %v1833_v52 }
 0x138   : > { %v1434_v49 = vpop.eup %1433  ;;  %v1254_v63 = vmul.f32 -1.442695, %v838_v1  ;;  %v837_v54 = vadd.f32 %v1784_v18, %v791_v41  ;;  %v777_v27 = vadd.f32 %v1844_v62, %v1813_v12  ;;  %v965_v23 = vunpack.c.l.bf16 %v1770_v34 }
 0x139   : > { %v974_v58 = vsub.f32 1.0, %v1434_v49  ;;  %v1006_v22 = vmul.f32 %v1434_v49, %v1432_v3  ;;  %v1892_v4 = vadd.f32 %v1005_v46, %v989_v56  ;;  %v1436_v8 = vpop.eup %1435  ;;  %v833_v49 = vadd.f32 %v1784_v18, %v781_v0 }
 0x13a   : > { %1449 = vpow2.f32 %v1254_v63  ;;  %v831_v63 = vadd.f32 %v1784_v18, %v777_v27  ;;  %v767_v12 = vadd.f32 %v1827_v42, %v1792_v38 }
 0x13b   : > { %v990_v7 = vmul.f32 %v974_v58, %v958_v48  ;;  %1451 = vpow2.f32 %v1250_v28 }
 0x13c   : > { %1453 = vpow2.f32 %v1249_v2 }
 0x13d   : > { %v1438_v9 = vpop.eup %1437  ;;  %v1895_v10 = vadd.f32 %v1006_v22, %v990_v7  ;;  %v771_v22 = vadd.f32 %v1835_v57, %v1801_v51  ;;  %v827_v51 = vadd.f32 %v1784_v18, %v767_v12 }
 0x13e   : > { %v975_v6 = vsub.f32 1.0, %v1438_v9  ;;  %v1007_v29 = vmul.f32 %v1438_v9, %v1436_v8 }
 0x13f   : > { %v1440_v53 = vpop.eup %1439  ;;  %v1035_v26 = vpack.c.bf16 %v1895_v10, %v1892_v4  ;;  %v829_v7 = vadd.f32 %v1784_v18, %v771_v22 }
 0x140   : > { %v976_v19 = vsub.f32 1.0, %v1440_v53  ;;  %v991_v21 = vmul.f32 %v975_v6, %v959_v5  ;;  %v1442_v31 = vpop.eup %1441  ;;  %v966_v5 = vunpack.c.h.bf16 %v1770_v34 }
 0x141   : > { %v1008_v37 = vmul.f32 %v1442_v31, %v1440_v53  ;;  %v1444_v24 = vpop.eup %1443  ;;  %v964_v53 = vunpack.c.h.bf16 %v1765_v33 }
 0x142   : > { %v992_v25 = vmul.f32 %v976_v19, %v960_v16  ;;  %v1902_v60 = vadd.f32 %v1007_v29, %v991_v21  ;;  %v916_v46 = vadd.f32 1.0, %v1444_v24  ;;  %v963_v29 = vunpack.c.l.bf16 %v1765_v33 }
 0x143   : > { %v1446_v30 = vpop.eup %1445 }
 0x144   : > { %v1905_v40 = vadd.f32 %v1008_v37, %v992_v25  ;;  %v917_v44 = vadd.f32 1.0, %v1446_v30  ;;  %v1448_v45 = vpop.eup %1447 }
 0x145   : > { %v915_v1 = vadd.f32 1.0, %v1448_v45  ;;  %v962_v45 = vunpack.c.h.bf16 %v1759_v32 }
 0x146   : > { %v1036_v48 = vpack.c.bf16 %v1905_v40, %v1902_v60  ;;  %1455 = vrcp.f32 %v917_v44 }
 0x147   : > { %v1450_v13 = vpop.eup %1449  ;;  %1457 = vtanh.f32 %v835_v20 }
 0x148   : > { %v918_v3 = vadd.f32 1.0, %v1450_v13  ;;  %1459 = vrcp.f32 %v916_v46  ;;  %v1452_v50 = vpop.eup %1451 }
 0x149   : > { %v1454_v56 = vpop.eup %1453  ;;  %v914_v59 = vadd.f32 1.0, %v1452_v50 }
 0x14a   : > { %1461 = vrcp.f32 %v918_v3  ;;  %v913_v58 = vadd.f32 1.0, %v1454_v56 }
 0x14b   : > { %1463 = vtanh.f32 %v837_v54  ;;  %v961_v54 = vunpack.c.l.bf16 %v1759_v32  ;;  %v1031_v32 = vld [vmem:[%s1999_s0] sm:$0xf] }
 0x14c   : > { %1465 = vrcp.f32 %v915_v1 }
 0x14d   : > { %1467 = vtanh.f32 %v833_v49 }
 0x14e   : > { %1469 = vrcp.f32 %v914_v59 }
 0x14f   : > { %1471 = vtanh.f32 %v831_v63 }
 0x150   : > { %1473 = vrcp.f32 %v913_v58 }
 0x151   : > { %1475 = vtanh.f32 %v829_v7 }
 0x152   : > { %1477 = vtanh.f32 %v827_v51 }
 0x153   : > { %v1456_v52 = vpop.eup %1455 }
 0x154   : > { %v981_v62 = vsub.f32 1.0, %v1456_v52  ;;  %v1458_v28 = vpop.eup %1457 }
 0x155   : > { %v1460_v8 = vpop.eup %1459  ;;  %v1013_v38 = vmul.f32 %v1458_v28, %v1456_v52 }
 0x156   : > { %v997_v16 = vmul.f32 %v981_v62, %v965_v23  ;;  %v980_v21 = vsub.f32 1.0, %v1460_v8 }
 0x157   : > { %v1462_v9 = vpop.eup %1461 }
 0x158   : > { %v1464_v2 = vpop.eup %1463  ;;  %v982_v57 = vsub.f32 1.0, %v1462_v9  ;;  %v1029_v31 = vadd.f32 %v1013_v38, %v997_v16  ;;  %v996_v24 = vmul.f32 %v980_v21, %v964_v53 }
 0x159   : > { %v1466_v6 = vpop.eup %1465  ;;  %v1014_v42 = vmul.f32 %v1464_v2, %v1462_v9 }
 0x15a   : > { %v998_v19 = vmul.f32 %v982_v57, %v966_v5  ;;  %v979_v34 = vsub.f32 1.0, %v1466_v6  ;;  %v1468_v25 = vpop.eup %1467 }
 0x15b   : > { %v1470_v18 = vpop.eup %1469  ;;  %v1012_v20 = vmul.f32 %v1468_v25, %v1460_v8 }
 0x15c   : > { %v1030_v15 = vadd.f32 %v1014_v42, %v998_v19  ;;  %v1472_v30 = vpop.eup %1471  ;;  %v995_v41 = vmul.f32 %v979_v34, %v963_v29  ;;  %v978_v33 = vsub.f32 1.0, %v1470_v18 }
 0x15d   : > { %v1474_v44 = vpop.eup %1473  ;;  %v1011_v46 = vmul.f32 %v1472_v30, %v1466_v6  ;;  %v1028_v13 = vadd.f32 %v1012_v20, %v996_v24 }
 0x15e   : > { %v1039_v37 = vpack.c.bf16 %v1030_v15, %v1029_v31  ;;  %v977_v3 = vsub.f32 1.0, %v1474_v44  ;;  %v1476_v0 = vpop.eup %1475  ;;  %v994_v27 = vmul.f32 %v978_v33, %v962_v45 }
 0x15f   : > { %v1027_v1 = vadd.f32 %v1011_v46, %v995_v41  ;;  %v1010_v49 = vmul.f32 %v1476_v0, %v1470_v18  ;;  %v1478_v59 = vpop.eup %1477 }
 0x160   : > { %1271 = vmatpush3.bf16.xpose.msra.mxu0 %v1039_v37  ;;  %v993_v56 = vmul.f32 %v977_v3, %v961_v54  ;;  %v1009_v63 = vmul.f32 %v1478_v59, %v1474_v44 }
 0x161   : > { %1272 = vmatprep.subr.bf16.mxu0 %v1546_v35  ;;  %v1038_v50 = vpack.c.bf16 %v1028_v13, %v1027_v1  ;;  %v1026_v58 = vadd.f32 %v1010_v49, %v994_v27 }
 0x162   : > { %v1025_v22 = vadd.f32 %v1009_v63, %v993_v56 }
 0x164   : > { %v1037_v52 = vpack.c.bf16 %v1026_v58, %v1025_v22 }
 0x168   : > { %1273 = vmatpush3.bf16.xpose.msra.mxu0 %v1038_v50 }
 0x169   : > { %1274 = vmatprep.subr.bf16.mxu0 %v1546_v35 }
 0x170   : > { %1275 = vmatpush3.bf16.xpose.msra.mxu0 %v1037_v52 }
 0x171   : > { %1276 = vmatprep.subr.bf16.mxu0 %v1546_v35 }
 0x178   : > { %1277 = vmatpush3.bf16.xpose.msra.mxu0 %v1036_v48 }
 0x179   : > { %1278 = vmatprep.subr.bf16.mxu0 %v1546_v35 }
 0x180   : > { %1279 = vmatpush3.bf16.xpose.msra.mxu0 %v1035_v26 }
 0x181   : > { %1280 = vmatprep.subr.bf16.mxu0 %v1546_v35 }
 0x188   : > { %1281 = vmatpush3.bf16.xpose.msra.mxu0 %v1034_v43 }
 0x189   : > { %1282 = vmatprep.subr.bf16.mxu0 %v1546_v35 }
 0x190   : > { %1283 = vmatpush3.bf16.xpose.msra.mxu0 %v1033_v36 }
 0x191   : > { %1284 = vmatprep.subr.bf16.mxu0 %v1546_v35 }
 0x198   : > { %1285 = vmatpush3.bf16.xpose.msra.mxu0 %v1032_v11 }
 0x19f   : > { %1287 = vmatmul.mubr.bf16.vlgmr.msra.gmra.mxu0 %v1031_v32 }
 0x25f   : > { %v1081_v55 = vpop.f32.mrf.mxu0 }
 0x260   : > { %v1082_v35 = vadd.f32 %v1255_v39, %v1081_v55 }
 0x261   : > { %v1288_v36 = vpop.f32.mrf.mxu0 }
 0x262   : > { %v1256_v17 = vmul.f32 -1.442695, %v1082_v35 }
 0x263   : > { %v1084_v61 = vpop.f32.mrf.mxu0 }
 0x264   : > { %1479 = vpow2.f32 %v1256_v17 }
 0x265   : > { %v1289_v14 = vpop.f32.mrf.mxu0 }
 0x271   : > { %v1480_v11 = vpop.eup %1479 }
 0x272   : > { %v1090_v47 = vadd.f32 1.0, %v1480_v11 }
 0x274   : > { %1481 = vrcp.f32 %v1090_v47 }
 0x281   : > { %v1482_v43 = vpop.eup %1481 }
 0x282   : > { %1093 = vst [vmem:[%s299_s18] sm:$0xff] %v1482_v43 }
 0x283   : > { %1496 = shalt.err (!%p1493_p4)
}
 0x284   : > { %s1497_s9 = scalar_lea.hbm %s1964_s29, 128  ;;  %s1501_s16 = scalar_lea.hbm %s2006_s7, 512 }
 0x285   : > { %p1498_p7 = scmp.ne.s32.totalorder %s1964_s29, %s1497_s9  ;;  %p1502_p10 = scmp.lt.s32.totalorder %s1964_s29, %s2006_s7 }
 0x286   : > { %p1503_p11 = scmp.lt.s32.totalorder %s1501_s16, %s1497_s9 }
 0x287   : > { %p1499_p8 = pnand %p1498_p7, %p1627_p5 }
 0x288   : > { %p1504_p12 = por %p1503_p11, %p1502_p10 }
 0x289   : > { %p1500_p9 = pneg %p1499_p8 }
 0x28b   : > { %p1505_p13 = pnand %p1504_p12, %p1500_p9 }
 0x28d   : > { %1508 = shalt.err (!%p1505_p13)
}
 0x28e   : > { %1290 = dma.vmem_to_hbm [thread:$0]  (%p1627_p5), %s1109_s19, 128, %s1964_s29, %s1095_s20  }
 0x28f PF: > { %p1296_p0 = scmp.ge.s32.totalorder %s1543_s27, 2  ;;  %s1120_s21 = sand.u32 1, %s1531_s24  }
 0x290   : > { %s1121_s15 = scalar_lea.sflag [#allocation3], %s1120_s21 }
 0x291   : > { %p1293_p1 = pnand %p1296_p0, %p1631_p6 }
 0x293   : > { %p1294_p2 = pneg %p1293_p1 }
 0x295   : > { %1526 = dma.done.wait (%p1294_p2), %s1121_s15, 128  }
 0x296   : > { %1528 = vsyncadd (%p1294_p2), %s1121_s15, 4294967168  ;;  %p17_p3 = scmp.ge.s32.totalorder %s1614_s30, 6   ;;  %s2009_s24 = smov %s1535_s25 }
 0x297   : > { %s2010_s25 = smov %s1539_s26  ;;  %s2011_s26 = smov %s1625_s10 }
 0x298   : > { %s2012_s27 = smov %s1614_s30  ;;  %19 = sbr.rel (!%p17_p3) target bundleno = 3 (0x3), region = 89 }
 0x29d   :  { %1126 = vsyncpa [#allocation3], 1 }
 0x29e   :  { %1128 = vsyncpa [#allocation3 + $0x1], 1 }

</bundles_post_ra>
